<compile_context>
chip_gen: v7x
topology: tpu7x:2x2x1
jax: 0.10.0
libtpu: 0.0.40
codegen_flags: <defaults>
</compile_context>

<pallas_src>
import functools

import jax
import jax.numpy as jnp
from jax import lax
from jax.experimental import pallas as pl
from jax.experimental.pallas import tpu as pltpu


def _mha_kernel(x_ref, w_qkv_ref, o_ref, *, num_heads, head_size):
    # x_ref:     (1, T, C)         activations for the current batch element (f32)
    # w_qkv_ref: (C, H*3*hs)       fused, head-contiguous [q|k|v] weights (bf16,
    #                              C**-0.5 already folded into the q columns)
    # o_ref:     (1, T, H*hs)      output in concat-over-heads layout (f32)
    hs = head_size
    x = x_ref[0].astype(jnp.bfloat16)        # bf16 MXU operand
    w = w_qkv_ref[...]                       # already bf16, resident across grid

    # One fused projection for all heads and all of Q/K/V -> (T, H*3*hs).
    # f32 accumulation on the MXU, then a single cast so the per-head q/k/v
    # slices are bf16 MXU operands (and the intermediate is half the bytes).
    qkv = jnp.dot(x, w, preferred_element_type=jnp.float32).astype(jnp.bfloat16)

    T = x.shape[0]
    # Causal (lower-triangular) mask, shared by every head.
    row = lax.broadcasted_iota(jnp.int32, (T, T), 0)
    col = lax.broadcasted_iota(jnp.int32, (T, T), 1)
    causal = col <= row
    neg_big = jnp.float32(-1e30)             # finite: no NaN hazard on masked rows

    # TODO(synk): if num_heads grows, switch this static unroll to
    # lax.fori_loop (or a grid axis) so buffer live ranges stay bounded.
    for h in range(num_heads):
        # One contiguous per-head slab [q_h | k_h | v_h] of width 3*hs.
        slab = qkv[:, h * 3 * hs:(h + 1) * 3 * hs]
        q = slab[:, 0 * hs:1 * hs]           # (T, hs) bf16, scale already folded in
        k = slab[:, 1 * hs:2 * hs]           # (T, hs) bf16
        v = slab[:, 2 * hs:3 * hs]           # (T, hs) bf16

        # scores = (q * C^-0.5) @ k^T ; contract last dims, no explicit transpose.
        scores = lax.dot_general(
            q, k, dimension_numbers=(((1,), (1,)), ((), ())),
            preferred_element_type=jnp.float32)                       # (T, T) f32
        scores = jnp.where(causal, scores, neg_big)

        # Numerically-stable softmax in f32; reciprocal runs on the EUP slot.
        m = jnp.max(scores, axis=-1, keepdims=True)
        e = jnp.exp(scores - m)
        p = e * pl.reciprocal(jnp.sum(e, axis=-1, keepdims=True), approx=True)

        head_out = jnp.dot(p.astype(jnp.bfloat16), v,
                           preferred_element_type=jnp.float32)        # (T, hs) f32

        # Direct per-head store into the concat-over-heads output block
        # (== torch.cat(..., dim=-1)); bounds live ranges, no lane concatenate.
        o_ref[0, :, h * hs:(h + 1) * hs] = head_out.astype(o_ref.dtype)


def fuse_mha_params(wq, wk, wv, emb_size):
    """One-time (init-time) parameter fusion.

    wq/wk/wv: (H, C, hs) per-head weights in the `x @ W` orientation.
    Returns a (C, H*3*hs) bf16 matrix with head-contiguous [q_h | k_h | v_h]
    column slabs and the C**-0.5 score scale folded into the q columns.
    """
    H, C, hs = wq.shape
    scale = jnp.float32(emb_size) ** jnp.float32(-0.5)
    per_head = jnp.concatenate([wq * scale, wk, wv], axis=-1)    # (H, C, 3*hs)
    fused = per_head.transpose(1, 0, 2).reshape(C, H * 3 * hs)   # (C, H*3*hs)
    return fused.astype(jnp.bfloat16)


def multi_headed_attention(x, w_qkv, *, num_heads, head_size):
    """x: (B, T, C) f32; w_qkv: fused (C, H*3*hs) bf16 -> (B, T, H*hs) f32."""
    B, T, C = x.shape
    fused_width = 3 * num_heads * head_size
    assert w_qkv.shape == (C, fused_width)

    kernel = functools.partial(
        _mha_kernel, num_heads=num_heads, head_size=head_size)

    return pl.pallas_call(
        kernel,
        out_shape=jax.ShapeDtypeStruct((B, T, num_heads * head_size), x.dtype),
        grid_spec=pltpu.PrefetchScalarGridSpec(
            num_scalar_prefetch=0,
            grid=(B,),                                   # >=2 steps -> both v7x TCs busy
            in_specs=[
                pl.BlockSpec((1, T, C), lambda b: (b, 0, 0)),          # x[b]
                # Constant index_map -> fused weight fetched once & kept resident.
                pl.BlockSpec((C, fused_width), lambda b: (0, 0)),
            ],
            out_specs=pl.BlockSpec((1, T, num_heads * head_size),
                                   lambda b: (b, 0, 0)),
        ),
        compiler_params=pltpu.CompilerParams(
            dimension_semantics=("parallel",)),
    )(x, w_qkv)


def _reference(x, wq, wk, wv):
    """Pure-JAX f32 reference matching the PyTorch module semantics."""
    B, T, C = x.shape
    H, _, hs = wq.shape
    q = jnp.einsum('btc,hcs->bhts', x, wq)
    k = jnp.einsum('btc,hcs->bhts', x, wk)
    v = jnp.einsum('btc,hcs->bhts', x, wv)
    scores = jnp.einsum('bhts,bhus->bhtu', q, k) * (C ** -0.5)
    mask = jnp.tril(jnp.ones((T, T), dtype=bool))
    scores = jnp.where(mask, scores, -jnp.inf)
    p = jax.nn.softmax(scores, axis=-1)
    o = jnp.einsum('bhtu,bhus->bhts', p, v)
    return o.transpose(0, 2, 1, 3).reshape(B, T, H * hs)


if __name__ == "__main__":
    # Module hyper-params (small, consistent with the forward pass):
    batch = 2
    context_window = 8          # T
    emb_size = 32               # C
    head_size = 8
    num_heads = 4
    # dropout = 0.0 (eval-mode identity)

    key = jax.random.PRNGKey(0)
    kx, kq, kk, kv = jax.random.split(key, 4)
    x = jax.random.normal(kx, (batch, context_window, emb_size), dtype=jnp.float32)
    # Per-head projection weights, (H, C, head_size), x @ W orientation.
    wq = jax.random.normal(kq, (num_heads, emb_size, head_size), dtype=jnp.float32) * 0.1
    wk = jax.random.normal(kk, (num_heads, emb_size, head_size), dtype=jnp.float32) * 0.1
    wv = jax.random.normal(kv, (num_heads, emb_size, head_size), dtype=jnp.float32) * 0.1

    # Init-time fusion (hoisted out of the forward path).
    w_qkv = jax.block_until_ready(fuse_mha_params(wq, wk, wv, emb_size))

    out = multi_headed_attention(x, w_qkv, num_heads=num_heads, head_size=head_size)
    out = jax.block_until_ready(out)

    ref = _reference(x, wq, wk, wv)
    assert out.shape == (batch, context_window, num_heads * head_size)
    # bf16 MXU operands + approx reciprocal in the softmax -> loosened tolerance.
    assert jnp.allclose(out, ref, atol=2e-2, rtol=2e-2), \
        f"max abs err {jnp.max(jnp.abs(out - ref))}"

    print("KERNEL_OK")
</pallas_src>

<mosaic_0001>
module attributes {stable_mosaic.version = 11 : i64} {
  func.func @_mha_kernel(%arg0: i32, %arg1: memref<1x8x32xf32, #tpu.memory_space<vmem>>, %arg2: memref<32x96xbf16, #tpu.memory_space<vmem>>, %arg3: memref<1x8x32xf32, #tpu.memory_space<vmem>>) attributes {dimension_semantics = [#tpu.dimension_semantics<parallel>], iteration_bounds = array<i64: 2>, scalar_prefetch = 0 : i64, scratch_operands = 0 : i64, tpu.core_type = #tpu.core_type<tc>, window_params = [{transform_indices = @transform_0, window_bounds = array<i64: 1, 8, 32>}, {pipeline_mode = #tpu.pipeline_mode<synchronous>, transform_indices = @transform_1, window_bounds = array<i64: 32, 96>}, {transform_indices = @transform_2, window_bounds = array<i64: 1, 8, 32>}]} {
    %c0 = arith.constant 0 : index
    %c0_0 = arith.constant 0 : index
    %c0_1 = arith.constant 0 : index
    %0 = vector.load %arg1[%c0, %c0_0, %c0_1] : memref<1x8x32xf32, #tpu.memory_space<vmem>>, vector<1x8x32xf32>
    %1 = vector.shape_cast %0 : vector<1x8x32xf32> to vector<8x32xf32>
    %2 = arith.truncf %1 : vector<8x32xf32> to vector<8x32xbf16>
    %c0_2 = arith.constant 0 : index
    %c0_3 = arith.constant 0 : index
    %3 = vector.load %arg2[%c0_2, %c0_3] : memref<32x96xbf16, #tpu.memory_space<vmem>>, vector<32x96xbf16>
    %cst = arith.constant dense<0.000000e+00> : vector<8x96xf32>
    %4 = tpu.matmul %2, %3, %cst {dimension_numbers = #tpu.dot_dimension_numbers<[1], [0], [0], [1], [0, 0, 1, 1], [], []>} : vector<8x32xbf16>, vector<32x96xbf16>, vector<8x96xf32> -> vector<8x96xf32>
    %5 = arith.truncf %4 : vector<8x96xf32> to vector<8x96xbf16>
    %6 = tpu.iota {dimensions = array<i32: 0>} : vector<8x8xi32>
    %7 = tpu.iota {dimensions = array<i32: 1>} : vector<8x8xi32>
    %8 = arith.cmpi sle, %7, %6 : vector<8x8xi32>
    %9 = vector.extract_strided_slice %5 {offsets = [0, 0], sizes = [8, 24], strides = [1, 1]} : vector<8x96xbf16> to vector<8x24xbf16>
    %10 = vector.extract_strided_slice %9 {offsets = [0, 0], sizes = [8, 8], strides = [1, 1]} : vector<8x24xbf16> to vector<8x8xbf16>
    %11 = vector.extract_strided_slice %9 {offsets = [0, 8], sizes = [8, 8], strides = [1, 1]} : vector<8x24xbf16> to vector<8x8xbf16>
    %12 = vector.extract_strided_slice %9 {offsets = [0, 16], sizes = [8, 8], strides = [1, 1]} : vector<8x24xbf16> to vector<8x8xbf16>
    %cst_4 = arith.constant dense<0.000000e+00> : vector<8x8xf32>
    %13 = tpu.matmul %10, %11, %cst_4 {dimension_numbers = #tpu.dot_dimension_numbers<[1], [1], [0], [0], [0, 0, 1, 0], [], []>} : vector<8x8xbf16>, vector<8x8xbf16>, vector<8x8xf32> -> vector<8x8xf32>
    %cst_5 = arith.constant -1.000000e+30 : f32
    %14 = vector.broadcast %cst_5 : f32 to vector<8x8xf32>
    %15 = arith.select %8, %13, %14 : vector<8x8xi1>, vector<8x8xf32>
    %cst_6 = arith.constant dense<0xFF800000> : vector<8xf32>
    %16 = vector.multi_reduction <maximumf>, %15, %cst_6 [1] : vector<8x8xf32> to vector<8xf32>
    %17 = vector.shape_cast %16 : vector<8xf32> to vector<8x1xf32>
    %18 = vector.broadcast %17 : vector<8x1xf32> to vector<8x8xf32>
    %19 = arith.subf %15, %18 : vector<8x8xf32>
    %20 = math.exp %19 : vector<8x8xf32>
    %cst_7 = arith.constant dense<0.000000e+00> : vector<8xf32>
    %21 = vector.multi_reduction <add>, %20, %cst_7 [1] : vector<8x8xf32> to vector<8xf32>
    %22 = vector.shape_cast %21 : vector<8xf32> to vector<8x1xf32>
    %23 = tpu.reciprocal %22 {approx = true} : vector<8x1xf32> -> vector<8x1xf32>
    %24 = vector.broadcast %23 : vector<8x1xf32> to vector<8x8xf32>
    %25 = arith.mulf %20, %24 : vector<8x8xf32>
    %26 = arith.truncf %25 : vector<8x8xf32> to vector<8x8xbf16>
    %cst_8 = arith.constant dense<0.000000e+00> : vector<8x8xf32>
    %27 = tpu.matmul %26, %12, %cst_8 {dimension_numbers = #tpu.dot_dimension_numbers<[1], [0], [0], [1], [0, 0, 1, 1], [], []>} : vector<8x8xbf16>, vector<8x8xbf16>, vector<8x8xf32> -> vector<8x8xf32>
    %c0_9 = arith.constant 0 : index
    %c0_10 = arith.constant 0 : index
    %c0_11 = arith.constant 0 : index
    %28 = vector.load %arg3[%c0_9, %c0_10, %c0_11] : memref<1x8x32xf32, #tpu.memory_space<vmem>>, vector<1x8x8xf32>
    %29 = vector.shape_cast %28 : vector<1x8x8xf32> to vector<8x8xf32>
    %30 = vector.shape_cast %27 : vector<8x8xf32> to vector<1x8x8xf32>
    tpu.vector_store %arg3[%c0_9, %c0_10, %c0_11], %30 {strides = array<i32>} : memref<1x8x32xf32, #tpu.memory_space<vmem>>, vector<1x8x8xf32>,
    %31 = vector.extract_strided_slice %5 {offsets = [0, 24], sizes = [8, 24], strides = [1, 1]} : vector<8x96xbf16> to vector<8x24xbf16>
    %32 = vector.extract_strided_slice %31 {offsets = [0, 0], sizes = [8, 8], strides = [1, 1]} : vector<8x24xbf16> to vector<8x8xbf16>
    %33 = vector.extract_strided_slice %31 {offsets = [0, 8], sizes = [8, 8], strides = [1, 1]} : vector<8x24xbf16> to vector<8x8xbf16>
    %34 = vector.extract_strided_slice %31 {offsets = [0, 16], sizes = [8, 8], strides = [1, 1]} : vector<8x24xbf16> to vector<8x8xbf16>
    %cst_12 = arith.constant dense<0.000000e+00> : vector<8x8xf32>
    %35 = tpu.matmul %32, %33, %cst_12 {dimension_numbers = #tpu.dot_dimension_numbers<[1], [1], [0], [0], [0, 0, 1, 0], [], []>} : vector<8x8xbf16>, vector<8x8xbf16>, vector<8x8xf32> -> vector<8x8xf32>
    %cst_13 = arith.constant -1.000000e+30 : f32
    %36 = vector.broadcast %cst_13 : f32 to vector<8x8xf32>
    %37 = arith.select %8, %35, %36 : vector<8x8xi1>, vector<8x8xf32>
    %cst_14 = arith.constant dense<0xFF800000> : vector<8xf32>
    %38 = vector.multi_reduction <maximumf>, %37, %cst_14 [1] : vector<8x8xf32> to vector<8xf32>
    %39 = vector.shape_cast %38 : vector<8xf32> to vector<8x1xf32>
    %40 = vector.broadcast %39 : vector<8x1xf32> to vector<8x8xf32>
    %41 = arith.subf %37, %40 : vector<8x8xf32>
    %42 = math.exp %41 : vector<8x8xf32>
    %cst_15 = arith.constant dense<0.000000e+00> : vector<8xf32>
    %43 = vector.multi_reduction <add>, %42, %cst_15 [1] : vector<8x8xf32> to vector<8xf32>
    %44 = vector.shape_cast %43 : vector<8xf32> to vector<8x1xf32>
    %45 = tpu.reciprocal %44 {approx = true} : vector<8x1xf32> -> vector<8x1xf32>
    %46 = vector.broadcast %45 : vector<8x1xf32> to vector<8x8xf32>
    %47 = arith.mulf %42, %46 : vector<8x8xf32>
    %48 = arith.truncf %47 : vector<8x8xf32> to vector<8x8xbf16>
    %cst_16 = arith.constant dense<0.000000e+00> : vector<8x8xf32>
    %49 = tpu.matmul %48, %34, %cst_16 {dimension_numbers = #tpu.dot_dimension_numbers<[1], [0], [0], [1], [0, 0, 1, 1], [], []>} : vector<8x8xbf16>, vector<8x8xbf16>, vector<8x8xf32> -> vector<8x8xf32>
    %c0_17 = arith.constant 0 : index
    %c0_18 = arith.constant 0 : index
    %c8 = arith.constant 8 : index
    %50 = vector.load %arg3[%c0_17, %c0_18, %c8] : memref<1x8x32xf32, #tpu.memory_space<vmem>>, vector<1x8x8xf32>
    %51 = vector.shape_cast %50 : vector<1x8x8xf32> to vector<8x8xf32>
    %52 = vector.shape_cast %49 : vector<8x8xf32> to vector<1x8x8xf32>
    tpu.vector_store %arg3[%c0_17, %c0_18, %c8], %52 {strides = array<i32>} : memref<1x8x32xf32, #tpu.memory_space<vmem>>, vector<1x8x8xf32>,
    %53 = vector.extract_strided_slice %5 {offsets = [0, 48], sizes = [8, 24], strides = [1, 1]} : vector<8x96xbf16> to vector<8x24xbf16>
    %54 = vector.extract_strided_slice %53 {offsets = [0, 0], sizes = [8, 8], strides = [1, 1]} : vector<8x24xbf16> to vector<8x8xbf16>
    %55 = vector.extract_strided_slice %53 {offsets = [0, 8], sizes = [8, 8], strides = [1, 1]} : vector<8x24xbf16> to vector<8x8xbf16>
    %56 = vector.extract_strided_slice %53 {offsets = [0, 16], sizes = [8, 8], strides = [1, 1]} : vector<8x24xbf16> to vector<8x8xbf16>
    %cst_19 = arith.constant dense<0.000000e+00> : vector<8x8xf32>
    %57 = tpu.matmul %54, %55, %cst_19 {dimension_numbers = #tpu.dot_dimension_numbers<[1], [1], [0], [0], [0, 0, 1, 0], [], []>} : vector<8x8xbf16>, vector<8x8xbf16>, vector<8x8xf32> -> vector<8x8xf32>
    %cst_20 = arith.constant -1.000000e+30 : f32
    %58 = vector.broadcast %cst_20 : f32 to vector<8x8xf32>
    %59 = arith.select %8, %57, %58 : vector<8x8xi1>, vector<8x8xf32>
    %cst_21 = arith.constant dense<0xFF800000> : vector<8xf32>
    %60 = vector.multi_reduction <maximumf>, %59, %cst_21 [1] : vector<8x8xf32> to vector<8xf32>
    %61 = vector.shape_cast %60 : vector<8xf32> to vector<8x1xf32>
    %62 = vector.broadcast %61 : vector<8x1xf32> to vector<8x8xf32>
    %63 = arith.subf %59, %62 : vector<8x8xf32>
    %64 = math.exp %63 : vector<8x8xf32>
    %cst_22 = arith.constant dense<0.000000e+00> : vector<8xf32>
    %65 = vector.multi_reduction <add>, %64, %cst_22 [1] : vector<8x8xf32> to vector<8xf32>
    %66 = vector.shape_cast %65 : vector<8xf32> to vector<8x1xf32>
    %67 = tpu.reciprocal %66 {approx = true} : vector<8x1xf32> -> vector<8x1xf32>
    %68 = vector.broadcast %67 : vector<8x1xf32> to vector<8x8xf32>
    %69 = arith.mulf %64, %68 : vector<8x8xf32>
    %70 = arith.truncf %69 : vector<8x8xf32> to vector<8x8xbf16>
    %cst_23 = arith.constant dense<0.000000e+00> : vector<8x8xf32>
    %71 = tpu.matmul %70, %56, %cst_23 {dimension_numbers = #tpu.dot_dimension_numbers<[1], [0], [0], [1], [0, 0, 1, 1], [], []>} : vector<8x8xbf16>, vector<8x8xbf16>, vector<8x8xf32> -> vector<8x8xf32>
    %c0_24 = arith.constant 0 : index
    %c0_25 = arith.constant 0 : index
    %c16 = arith.constant 16 : index
    %72 = vector.load %arg3[%c0_24, %c0_25, %c16] : memref<1x8x32xf32, #tpu.memory_space<vmem>>, vector<1x8x8xf32>
    %73 = vector.shape_cast %72 : vector<1x8x8xf32> to vector<8x8xf32>
    %74 = vector.shape_cast %71 : vector<8x8xf32> to vector<1x8x8xf32>
    tpu.vector_store %arg3[%c0_24, %c0_25, %c16], %74 {strides = array<i32>} : memref<1x8x32xf32, #tpu.memory_space<vmem>>, vector<1x8x8xf32>,
    %75 = vector.extract_strided_slice %5 {offsets = [0, 72], sizes = [8, 24], strides = [1, 1]} : vector<8x96xbf16> to vector<8x24xbf16>
    %76 = vector.extract_strided_slice %75 {offsets = [0, 0], sizes = [8, 8], strides = [1, 1]} : vector<8x24xbf16> to vector<8x8xbf16>
    %77 = vector.extract_strided_slice %75 {offsets = [0, 8], sizes = [8, 8], strides = [1, 1]} : vector<8x24xbf16> to vector<8x8xbf16>
    %78 = vector.extract_strided_slice %75 {offsets = [0, 16], sizes = [8, 8], strides = [1, 1]} : vector<8x24xbf16> to vector<8x8xbf16>
    %cst_26 = arith.constant dense<0.000000e+00> : vector<8x8xf32>
    %79 = tpu.matmul %76, %77, %cst_26 {dimension_numbers = #tpu.dot_dimension_numbers<[1], [1], [0], [0], [0, 0, 1, 0], [], []>} : vector<8x8xbf16>, vector<8x8xbf16>, vector<8x8xf32> -> vector<8x8xf32>
    %cst_27 = arith.constant -1.000000e+30 : f32
    %80 = vector.broadcast %cst_27 : f32 to vector<8x8xf32>
    %81 = arith.select %8, %79, %80 : vector<8x8xi1>, vector<8x8xf32>
    %cst_28 = arith.constant dense<0xFF800000> : vector<8xf32>
    %82 = vector.multi_reduction <maximumf>, %81, %cst_28 [1] : vector<8x8xf32> to vector<8xf32>
    %83 = vector.shape_cast %82 : vector<8xf32> to vector<8x1xf32>
    %84 = vector.broadcast %83 : vector<8x1xf32> to vector<8x8xf32>
    %85 = arith.subf %81, %84 : vector<8x8xf32>
    %86 = math.exp %85 : vector<8x8xf32>
    %cst_29 = arith.constant dense<0.000000e+00> : vector<8xf32>
    %87 = vector.multi_reduction <add>, %86, %cst_29 [1] : vector<8x8xf32> to vector<8xf32>
    %88 = vector.shape_cast %87 : vector<8xf32> to vector<8x1xf32>
    %89 = tpu.reciprocal %88 {approx = true} : vector<8x1xf32> -> vector<8x1xf32>
    %90 = vector.broadcast %89 : vector<8x1xf32> to vector<8x8xf32>
    %91 = arith.mulf %86, %90 : vector<8x8xf32>
    %92 = arith.truncf %91 : vector<8x8xf32> to vector<8x8xbf16>
    %cst_30 = arith.constant dense<0.000000e+00> : vector<8x8xf32>
    %93 = tpu.matmul %92, %78, %cst_30 {dimension_numbers = #tpu.dot_dimension_numbers<[1], [0], [0], [1], [0, 0, 1, 1], [], []>} : vector<8x8xbf16>, vector<8x8xbf16>, vector<8x8xf32> -> vector<8x8xf32>
    %c0_31 = arith.constant 0 : index
    %c0_32 = arith.constant 0 : index
    %c24 = arith.constant 24 : index
    %94 = vector.load %arg3[%c0_31, %c0_32, %c24] : memref<1x8x32xf32, #tpu.memory_space<vmem>>, vector<1x8x8xf32>
    %95 = vector.shape_cast %94 : vector<1x8x8xf32> to vector<8x8xf32>
    %96 = vector.shape_cast %93 : vector<8x8xf32> to vector<1x8x8xf32>
    tpu.vector_store %arg3[%c0_31, %c0_32, %c24], %96 {strides = array<i32>} : memref<1x8x32xf32, #tpu.memory_space<vmem>>, vector<1x8x8xf32>,
    return
  }
  func.func @transform_0(%arg0: i32) -> (i32, i32, i32) {
    %c0_i32 = arith.constant 0 : i32
    %c0_i32_0 = arith.constant 0 : i32
    %c0_i32_1 = arith.constant 0 : i32
    return %arg0, %c0_i32, %c0_i32_0 : i32, i32, i32
  }
  func.func @transform_1(%arg0: i32) -> (i32, i32) {
    %c0_i32 = arith.constant 0 : i32
    %c0_i32_0 = arith.constant 0 : i32
    %c0_i32_1 = arith.constant 0 : i32
    return %c0_i32, %c0_i32_0 : i32, i32
  }
  func.func @transform_2(%arg0: i32) -> (i32, i32, i32) {
    %c0_i32 = arith.constant 0 : i32
    %c0_i32_0 = arith.constant 0 : i32
    %c0_i32_1 = arith.constant 0 : i32
    return %arg0, %c0_i32, %c0_i32_0 : i32, i32, i32
  }
}

</mosaic_0001>

<bundles_post_ra>
// kernel: tpu_custom_call.1
= control target key start
LH: loop header
LB: loop body
LE: loop exit
PB: predicated region body
PF: predicated region fallthrough
CT: control target
= control target key end

     0   :  { %7 = vsyncpa [#allocation3], 0  ;;  %s1438_s0 = inlined_call_operand.hbm [shape: f32[2,8,32], index: 0, kind: input, shape index: {}]   ;;  %s1439_s1 = inlined_call_operand.hbm [shape: bf16[32,96], index: 1, kind: input, shape index: {}]   ;;  %s1440_s2 = inlined_call_operand.hbm [shape: f32[2,8,32], index: 2, kind: output, shape index: {}]  }
   0x1   :  { %9 = vsyncpa [#allocation3 + $0x1], 0 }
   0x2   :  { %10 = vsyncpa [#allocation6], 0 }
   0x3   :  { %11 = vsyncpa [#allocation4], 0 }
   0x4   :  { %13 = vsyncpa [#allocation4 + $0x1], 0  ;;  %s1160_s9 = smov 0   ;;  %s1162_s10 = smov 0  }
   0x5   :  { %s1164_s11 = smov 0   ;;  %s1166_s12 = smov 0  }
   0x6 LB: > { %s1181_s13 = sadd.s32 4294967295, %s1122_s12   ;;  %s801_s14 = sadd.s32 4294967294, %s1122_s12   ;;  %s1122_s12 = sphi %s1166_s12, %s1460_s12   ;;  %s1118_s11 = sphi %s1164_s11, %s1459_s11   ;;  %s1114_s10 = sphi %s1162_s10, %s1458_s10   ;;  %s1110_s9 = sphi %s1160_s9, %s1457_s9  }
   0x7   : > { %p39_p0 = scmp.ne.s32.totalorder %s1114_s10, %s1110_s9  ;;  %p1441_p1 = scmp.eq.s32.totalorder %s1181_s13, 0 }
   0x8   : > { %p90_p3 = scmp.eq.s32.totalorder %s801_s14, 1  ;;  %p802_p5 = scmp.ge.s32.totalorder %s1122_s12, 1 }
   0x9   : > { %p1190_p4 = por %p1441_p1, %p39_p0  ;;  %p97_p7 = scmp.lt.s32.totalorder %s1122_s12, 3 }
   0xa   : > { %p1195_p6 = por %p90_p3, %p39_p0  ;;  %s1124_s18 = smov [#allocation5]  }
   0xb   : > { %s1444_s15 = scalar_select %p1190_p4, 1, 0 }
   0xc   : > { %s1445_s16 = scalar_select %p1195_p6, 1, 0 }
   0xd   : > { %p1200_p8 = pnand %p802_p5, %p97_p7  ;;  %s109_s19 = sshll.u32 %s1124_s18, 4  ;;  %s1204_s19 = int_to_ptr.vmem [resolvable:$true] %s109_s19 }
   0xe   : > { %s1216_s21 = sadd.s32 1, %s1122_s12   ;;  %s26_s22 = sadd.s32 1, %s1118_s11 }
   0xf   : > { %s1446_s17 = scalar_select %p1200_p8, 1, 0 }
  0x10   : > { %p909_p9 = pneg %p1200_p8  ;;  %s23_s23 = ssub.s32 %s1122_s12, %s1216_s21 }
  0x11   : > { %s994_s26 = scalar_lea.hbm %s1439_s1, 256 }
  0x12   : > { %p1211_p11 = pnand %p909_p9, %p1441_p1  ;;  %p995_p12 = scmp.ne.s32.totalorder %s1439_s1, %s994_s26 }
  0x13   : > { %p1001_p5 = scmp.lt.u32.totalorder %s994_s26, %s1439_s1 }
  0x14   : > { %p996_p13 = pneg %p1211_p11 }
  0x16   : > { %p997_p0 = pnand %p996_p13, %p995_p12 }
  0x18   : > { %p998_p3 = pneg %p997_p0 }
  0x1a   : > { %p1003_p7 = pnand %p1001_p5, %p998_p3 }
  0x1c   : > { %1006 = shalt.err (!%p1003_p7)
}
  0x1d   : > { %s1007_s3 = scalar_lea.vmem %s1204_s19, 256  ;;  %p1015_p2 = scmp.lt.s32.totalorder %s1204_s19, %s1204_s19 }
  0x1e   : > { %p1008_p9 = scmp.ne.s32.totalorder %s1204_s19, %s1007_s3  ;;  %p1016_p6 = scmp.lt.s32.totalorder %s1007_s3, %s1007_s3 }
  0x20   : > { %p1010_p10 = pnand %p1008_p9, %p996_p13  ;;  %p1017_p4 = por %p1016_p6, %p1015_p2 }
  0x22   : > { %p1011_p1 = pneg %p1010_p10 }
  0x24   : > { %p1018_p8 = pnand %p1017_p4, %p1011_p1 }
  0x26   : > { %1021 = shalt.err (!%p1018_p8)
}
  0x27   : > { %s1125_s4 = smov 64   ;;  %s1126_s5 = smov 4  }
  0x28   : > { %912 = dma.hbm_to_vmem [thread:$0]  (!%p1211_p11), %s1439_s1, 256, %s1204_s19, [#allocation6], %s1125_s4, %s1125_s4, %s1126_s5  }
  0x29   : > { %p24_p2 = scmp.eq.s32.totalorder %s23_s23, 0  ;;  %p33_p1 = scmp.ne.s32.totalorder %s1118_s11, %s1114_s10 }
  0x2a   : > { %p34_p4 = scmp.eq.s32.totalorder %s1122_s12, 0  ;;  %p922_p6 = scmp.lt.s32.totalorder %s1122_s12, 2 }
  0x2b   : > { %s1247_s8 = scalar_select %p24_p2, %s1118_s11, %s26_s22  }
  0x2c   : > { %p35_p8 = por %p34_p4, %p33_p1  ;;  %p1448_p10 = scmp.eq.s32.totalorder %s1181_s13, 1 }
  0x2d   : > { %s123_s18 = sand.u32 1, %s1118_s11   ;;  %s806_s24 = sshll.u32 %s1122_s12, 7 }
  0x2e   : > { %p1251_p12 = por %p1448_p10, %p33_p1  ;;  %s805_s25 = sshll.u32 %s123_s18, 3 }
  0x2f   : > { %s1260_s27 = scalar_lea.hbm %s1438_s0, %s806_s24  ;;  %s127_s19 = scalar_lea.vmem [#allocation2], %s805_s25 }
  0x30   : > { %s134_s22 = sshll.u32 %s127_s19, 4  ;;  %p1262_p11 = pnand %p922_p6, %p35_p8  ;;  %s1266_s22 = int_to_ptr.vmem [resolvable:$true] %s134_s22 }
  0x31   : > { %s124_s28 = scalar_lea.sflag [#allocation3], %s123_s18  ;;  %s1022_s29 = scalar_lea.hbm %s1260_s27, 128 }
  0x32   : > { %p1023_p13 = scmp.ne.s32.totalorder %s1260_s27, %s1022_s29  ;;  %p1024_p0 = pneg %p1262_p11 }
  0x33   : > { %s1027_s4 = scalar_lea.hbm %s1438_s0, 256  ;;  %p1028_p7 = scmp.lt.u32.totalorder %s1260_s27, %s1438_s0 }
  0x34   : > { %p1025_p3 = pnand %p1024_p0, %p1023_p13  ;;  %p1029_p9 = scmp.lt.u32.totalorder %s1027_s4, %s1022_s29 }
  0x35   : > { %p1031_p1 = scmp.lt.u32.totalorder %s1022_s29, %s1260_s27 }
  0x36   : > { %p1026_p5 = pneg %p1025_p3  ;;  %p1030_p2 = por %p1029_p9, %p1028_p7 }
  0x38   : > { %p1032_p4 = por %p1031_p1, %p1030_p2 }
  0x3a   : > { %p1033_p6 = pnand %p1032_p4, %p1026_p5 }
  0x3c   : > { %1036 = shalt.err (!%p1033_p6)
}
  0x3d   : > { %s1037_s7 = scalar_lea.vmem %s1266_s22, 128  ;;  %s1127_s18 = smov [#allocation2]  }
  0x3e   : > { %p1038_p8 = scmp.ne.s32.totalorder %s1266_s22, %s1037_s7  ;;  %s1042_s24 = sshll.u32 %s1127_s18, 4  ;;  %s1043_s24 = int_to_ptr.vmem [resolvable:$false] %s1042_s24 }
  0x3f   : > { %s1044_s25 = scalar_lea.vmem %s1043_s24, 256  ;;  %p1045_p3 = scmp.lt.s32.totalorder %s1266_s22, %s1043_s24 }
  0x40   : > { %p1040_p10 = pnand %p1038_p8, %p1024_p0  ;;  %p1046_p7 = scmp.lt.s32.totalorder %s1044_s25, %s1037_s7 }
  0x42   : > { %p1041_p13 = pneg %p1040_p10  ;;  %p1047_p9 = por %p1046_p7, %p1045_p3 }
  0x44   : > { %p1048_p2 = pnand %p1047_p9, %p1041_p13 }
  0x46   : > { %1051 = shalt.err (!%p1048_p2)
}
  0x47   : > { %916 = dma.hbm_to_vmem [thread:$0]  (!%p1262_p11), %s1260_s27, 128, %s1266_s22, %s124_s28  }
  0x48   : > { %p1451_p5 = scmp.ne.s32.totalorder %s1446_s17, 0 }
  0x49   : > { %s1296_s20 = sand.u32 (!%p1451_p5), 1, %s1114_s10   ;;  %p1452_p0 = scmp.ne.s32.totalorder (!%p1451_p5), %s1444_s15, 0 }
  0x4a   : > { %143 = sbr.rel (%p1451_p5) target bundleno = 1364 (0x554), region = 28  ;;  %s808_s26 = sshll.u32 (!%p1451_p5), %s1296_s20, 3 }
  0x4b   : > { %s146_s19 = scalar_lea.sflag (!%p1451_p5), [#allocation3], %s1296_s20  ;;  %s149_s29 = scalar_lea.vmem (!%p1451_p5), [#allocation2], %s808_s26 }
  0x51   : > { %1097 = dma.done.wait (%p1452_p0), %s146_s19, 128  }
  0x52   : > { %1099 = vsyncadd (%p1452_p0), %s146_s19, 4294967168  ;;  %p1453_p11 = scmp.eq.s32.totalorder %s1181_s13, 0 }
  0x54   : > { %1101 = dma.done.wait (%p1453_p11), [#allocation6], 256   ;;  %p1454_p1 = pmov %p1453_p11 }
  0x55   : > { %v1128_v0 = vmov 0.0   ;;  %vm1129_vm0 = vmmov 0   ;;  %v976_v1 = vld [vmem:[#allocation5] sm:$0xff]   ;;  %v977_v2 = vld [vmem:[#allocation5 + $0x8] sm:$0xff]   ;;  %v175_v3 = vld [vmem:[%s149_s29] sm:$0xff]  ;;  %vm193_vm1 = vcmask 261120   ;;  %v238_v21 = vlaneseq }
  0x56   : > { %1103 = vsyncadd (%p1454_p1), [#allocation6], 4294967040  ;;  %845 = vmatprep.subr.bf16.mxu0 %v1128_v0  ;;  %849 = vmatprep.mubr.msk.bf16.mxu0 %vm1129_vm0, %v1128_v0  ;;  %v176_v4 = vpack.c.bf16 %v175_v3, %v175_v3  ;;  %s1130_s15 = smov 104   ;;  %s1131_s17 = smov 120   ;;  %vm246_vm2 = vcmask 64512   ;;  %vm311_vm4 = vcmask 1043456  }
  0x57   : > { %853 = vmatprep.subr.bf16.mxu1 %v1128_v0  ;;  %855 = vmatprep.mubr.msk.bf16.mxu1 %vm1129_vm0, %v1128_v0  ;;  %s1132_s27 = smov 72   ;;  %s1133_s22 = smov 96   ;;  %v239_v22 = vshrl.u32 %v238_v21, 7  ;;  %v241_v23 = vand.u32 127, %v238_v21  ;;  %vm471_vm5 = vcmask 130112   ;;  %vm588_vm6 = vcmask 195712  }
  0x58   : > { %846 = vmatpush3.bf16.msra.mxu0 %v976_v1  ;;  %s1134_s23 = smov 48   ;;  %s1135_s28 = smov 80   ;;  %vm705_vm7 = vcmask 261312  }
  0x59   : > { %847 = vmatprep.subr.bf16.mxu0 %v1128_v0  ;;  %s1136_s30 = smov 56   ;;  %vm242_vm3 = vcmp.le.s32.totalorder %v241_v23, %v239_v22  ;;  %s1137_s3 = smov 88  }
  0x5a   : > { %s1138_s4 = smov 112   ;;  %s1139_s5 = smov 40  }
  0x5b   : > { %s1140_s6 = smov 64   ;;  %s1382_s7 = scalar_lea.vmem [#allocation7], %s808_s26 }
  0x5c   : > { %848 = vmatpush3.bf16.msra.mxu0 %v977_v2  ;;  %s1141_s18 = smov 8   ;;  %s1142_s24 = smov 16  }
  0x5d   : > { %859 = vmatprep.subr.bf16.mxu0 %v1128_v0  ;;  %s1143_s25 = smov 24   ;;  %s823_s26 = sshll.u32 %s1181_s13, 7 }
  0x5e   : > { %s721_s19 = sshll.u32 %s1382_s7, 4  ;;  %s1144_s13 = smov [#allocation7]   ;;  %s1395_s19 = int_to_ptr.vmem [resolvable:$true] %s721_s19 }
  0x5f   : > { %850 = vmatmul.mubr.msk.bf16.vlgmr.msra.gmra.mrb[0].mxu0 %vm193_vm1, %v176_v4 }
  0x60   : > { %861 = vmatprep.mubr.msk.bf16.mxu0 %vm1129_vm0, %v1128_v0 }
 0x132   : > { %v231_v5 = vpop.f32.mrb[0].mxu0 }
 0x133   : > { %v1320_v6 = vpack.c.bf16 %v231_v5, %v231_v5  ;;  %v851_v7 = vpop.f32.mrb[1].mxu0 }
 0x134   : > { %v234_v8 = vpop.f32.mrb[2].mxu0 }
 0x135   : > { %356 = vrot.lane.b32.xlu1 %v1320_v6, %s1130_s15  ;;  %244 = vrot.lane.b32.xlu0 %v1320_v6, %s1131_s17  ;;  %v852_v9 = vpop.f32.mrb[3].mxu0  ;;  %s1393_s17 = scalar_lea.hbm %s1440_s2, %s823_s26 }
 0x139   : > { %475 = vrot.lane.b32.xlu1 %v1320_v6, %s1132_s27  ;;  %358 = vrot.lane.b32.xlu0 %v1320_v6, %s1133_s22  ;;  %s708_s27 = scalar_lea.sflag [#allocation4], %s1296_s20  ;;  %s1052_s22 = scalar_lea.vmem %s1395_s19, 128 }
 0x13a   : > { %p1053_p4 = scmp.ne.s32.totalorder %s1395_s19, %s1052_s22 }
 0x13c   : > { %p1054_p6 = pnand %p1053_p4, %p1251_p12 }
 0x13d   : > { %592 = vrot.lane.b32.xlu1 %v1320_v6, %s1134_s23  ;;  %473 = vrot.lane.b32.xlu0 %v1320_v6, %s1135_s28  ;;  %s1056_s23 = sshll.u32 %s1144_s13, 4  ;;  %s1057_s23 = int_to_ptr.vmem [resolvable:$false] %s1056_s23 }
 0x13e   : > { %p1055_p8 = pneg %p1054_p6  ;;  %s1058_s28 = scalar_lea.vmem %s1057_s23, 256 }
 0x13f   : > { %p1059_p10 = scmp.lt.s32.totalorder %s1395_s19, %s1057_s23  ;;  %p1060_p13 = scmp.lt.s32.totalorder %s1058_s28, %s1052_s22 }
 0x141   : > { %590 = vrot.lane.b32.xlu0 %v1320_v6, %s1136_s30  ;;  %p1061_p3 = por %p1060_p13, %p1059_p10 }
 0x143   : > { %p1062_p7 = pnand %p1061_p3, %p1055_p8 }
 0x1a7   : > { %v245_v10 = vpop.permute.xlu0 %244  ;;  %v357_v13 = vpop.permute.xlu1 %356 }
 0x1a8   : > { %v251_v11 = vsel %vm246_vm2, %v245_v10, 0 }
 0x1a9   : > { %854 = vmatpush3.bf16.xpose.msra.mxu1 %v251_v11 }
 0x1aa   : > { %865 = vmatprep.subr.bf16.mxu1 %v1128_v0 }
 0x1ab   : > { %v359_v12 = vpop.permute.xlu0 %358  ;;  %v476_v15 = vpop.permute.xlu1 %475 }
 0x1ac   : > { %v364_v14 = vsel %vm246_vm2, %v359_v12, 0  ;;  %v481_v16 = vsel %vm246_vm2, %v476_v15, 0 }
 0x1af   : > { %v593_v17 = vpop.permute.xlu1 %592  ;;  %v474_v18 = vpop.permute.xlu0 %473 }
 0x1b0   : > { %856 = vmatmul.mubr.msk.bf16.vlgmr.msra.gmra.mrb[0].mxu1 %vm246_vm2, %v1320_v6  ;;  %v598_v19 = vsel %vm246_vm2, %v593_v17, 0 }
 0x1b1   : > { %866 = vmatpush3.bf16.xpose.msra.mxu1 %v364_v14  ;;  %867 = vmatprep.mubr.msk.bf16.mxu1 %vm1129_vm0, %v1128_v0 }
 0x1b2   : > { %877 = vmatprep.subr.bf16.mxu1 %v1128_v0 }
 0x1b3   : > { %v591_v20 = vpop.permute.xlu0 %590 }
 0x1b8   : > { %868 = vmatmul.mubr.msk.bf16.vlgmr.msra.gmra.mrb[4].mxu1 %vm246_vm2, %v357_v13 }
 0x1b9   : > { %878 = vmatpush3.bf16.xpose.msra.mxu1 %v481_v16  ;;  %879 = vmatprep.mubr.msk.bf16.mxu1 %vm1129_vm0, %v1128_v0 }
 0x1ba   : > { %889 = vmatprep.subr.bf16.mxu1 %v1128_v0 }
 0x1c0   : > { %880 = vmatmul.mubr.msk.bf16.vlgmr.msra.gmra.mrb[8].mxu1 %vm246_vm2, %v474_v18 }
 0x1c1   : > { %890 = vmatpush3.bf16.xpose.msra.mxu1 %v598_v19  ;;  %891 = vmatprep.mubr.msk.bf16.mxu1 %vm1129_vm0, %v1128_v0 }
 0x1c8   : > { %892 = vmatmul.mubr.msk.bf16.vlgmr.msra.gmra.mrb[12].mxu1 %vm246_vm2, %v591_v20 }
 0x283   : > { %v287_v24 = vpop.f32.mrb[0].mxu1 }
 0x284   : > { %v293_v25 = vsel %vm242_vm3, %v287_v24, -1e+30  ;;  %v857_v26 = vpop.f32.mrb[1].mxu1 }
 0x285   : > { %v290_v27 = vpop.f32.mrb[2].mxu1  ;;  %v294_v28 = vsel %vm246_vm2, %v293_v25, -inf }
 0x286   : > { %295 = vmax.xlane.f32.xlu1 %v294_v28  ;;  %v858_v29 = vpop.f32.mrb[3].mxu1 }
 0x28b   : > { %v400_v30 = vpop.f32.mrb[4].mxu1 }
 0x28c   : > { %v406_v31 = vsel %vm242_vm3, %v400_v30, -1e+30  ;;  %v869_v32 = vpop.f32.mrb[5].mxu1 }
 0x28d   : > { %v403_v33 = vpop.f32.mrb[6].mxu1  ;;  %v407_v34 = vsel %vm246_vm2, %v406_v31, -inf }
 0x28e   : > { %408 = vmax.xlane.f32.xlu0 %v407_v34  ;;  %v870_v35 = vpop.f32.mrb[7].mxu1 }
 0x293   : > { %v517_v36 = vpop.f32.mrb[8].mxu1 }
 0x294   : > { %v523_v37 = vsel %vm242_vm3, %v517_v36, -1e+30  ;;  %v881_v38 = vpop.f32.mrb[9].mxu1 }
 0x295   : > { %v520_v39 = vpop.f32.mrb[10].mxu1  ;;  %v524_v40 = vsel %vm246_vm2, %v523_v37, -inf }
 0x296   : > { %525 = vmax.xlane.f32.xlu0 %v524_v40  ;;  %v882_v41 = vpop.f32.mrb[11].mxu1 }
 0x29b   : > { %v634_v42 = vpop.f32.mrb[12].mxu1 }
 0x29c   : > { %v640_v43 = vsel %vm242_vm3, %v634_v42, -1e+30  ;;  %v893_v44 = vpop.f32.mrb[13].mxu1 }
 0x29d   : > { %v637_v45 = vpop.f32.mrb[14].mxu1  ;;  %v641_v46 = vsel %vm246_vm2, %v640_v43, -inf }
 0x29e   : > { %642 = vmax.xlane.f32.xlu1 %v641_v46  ;;  %v894_v47 = vpop.f32.mrb[15].mxu1 }
 0x313   : > { %v296_v48 = vpop.xlane.xlu1 %295 }
 0x314   : > { %v297_v49 = vsub.f32 %v293_v25, %v296_v48 }
 0x316   : > { %v298_v50 = vmul.f32 1.442695, %v297_v49 }
 0x318   : > { %978 = vpow2.f32 %v298_v50 }
 0x31b   : > { %v409_v51 = vpop.xlane.xlu0 %408 }
 0x31c   : > { %v410_v52 = vsub.f32 %v406_v31, %v409_v51 }
 0x31e   : > { %v411_v53 = vmul.f32 1.442695, %v410_v52 }
 0x320   : > { %980 = vpow2.f32 %v411_v53 }
 0x322   : > { %v979_v54 = vpop.eup %978 }
 0x323   : > { %v526_v55 = vpop.xlane.xlu0 %525  ;;  %v300_v56 = vsel %vm246_vm2, %v979_v54, 0.0 }
 0x324   : > { %v527_v57 = vsub.f32 %v523_v37, %v526_v55  ;;  %301 = vadd.xlane.f32.xlu0 %v300_v56 }
 0x326   : > { %v528_v58 = vmul.f32 1.442695, %v527_v57 }
 0x328   : > { %982 = vpow2.f32 %v528_v58 }
 0x32a   : > { %v981_v59 = vpop.eup %980 }
 0x32b   : > { %v413_v60 = vsel %vm246_vm2, %v981_v59, 0.0  ;;  %v643_v63 = vpop.xlane.xlu1 %642 }
 0x32c   : > { %414 = vadd.xlane.f32.xlu1 %v413_v60  ;;  %v644_v1 = vsub.f32 %v640_v43, %v643_v63 }
 0x32e   : > { %v645_v2 = vmul.f32 1.442695, %v644_v1 }
 0x330   : > { %984 = vpow2.f32 %v645_v2 }
 0x332   : > { %v983_v61 = vpop.eup %982 }
 0x333   : > { %v530_v62 = vsel %vm246_vm2, %v983_v61, 0.0 }
 0x334   : > { %531 = vadd.xlane.f32.xlu0 %v530_v62 }
 0x33a   : > { %v985_v3 = vpop.eup %984 }
 0x33b   : > { %v647_v4 = vsel %vm246_vm2, %v985_v3, 0.0 }
 0x33d   : > { %419 = vrot.lane.b32.xlu1 %v1320_v6, %s1137_s3 }
 0x34a   : > { %306 = vrot.lane.b32.xlu0 %v1320_v6, %s1138_s4 }
 0x34e   : > { %653 = vrot.lane.b32.xlu0 %v1320_v6, %s1139_s5 }
 0x361   : > { %648 = vadd.xlane.f32.xlu1 %v647_v4 }
 0x372   : > { %536 = vrot.lane.b32.xlu1 %v1320_v6, %s1140_s6 }
 0x3b1   : > { %v302_v5 = vpop.xlane.xlu0 %301 }
 0x3b2   : > { %986 = vrcp.f32 %v302_v5 }
 0x3b9   : > { %v415_v7 = vpop.xlane.xlu1 %414 }
 0x3ba   : > { %988 = vrcp.f32 %v415_v7 }
 0x3bc   : > { %v987_v8 = vpop.eup %986 }
 0x3bd   : > { %v304_v10 = vmul.f32 %v987_v8, %v979_v54  ;;  %v420_v13 = vpop.permute.xlu1 %419 }
 0x3be   : > { %v425_v16 = vsel %vm311_vm4, %v420_v13, 0 }
 0x3bf   : > { %v305_v14 = vpack.c.bf16 %v304_v10, %v304_v10 }
 0x3c1   : > { %v532_v9 = vpop.xlane.xlu0 %531 }
 0x3c2   : > { %990 = vrcp.f32 %v532_v9 }
 0x3c4   : > { %v989_v15 = vpop.eup %988 }
 0x3c5   : > { %v307_v11 = vpop.permute.xlu0 %306  ;;  %v417_v6 = vmul.f32 %v989_v15, %v981_v59 }
 0x3c6   : > { %v313_v12 = vsel %vm311_vm4, %v307_v11, 0 }
 0x3c7   : > { %860 = vmatpush3.bf16.msra.mxu0 %v313_v12  ;;  %v418_v17 = vpack.c.bf16 %v417_v6, %v417_v6 }
 0x3c8   : > { %871 = vmatprep.subr.bf16.mxu0 %v1128_v0 }
 0x3c9   : > { %v654_v23 = vpop.permute.xlu0 %653 }
 0x3ca   : > { %862 = vmatmul.mubr.msk.bf16.vlgmr.msra.gmra.mrb[4].mxu0 %vm246_vm2, %v305_v14  ;;  %v659_v25 = vsel %vm311_vm4, %v654_v23, 0 }
 0x3cb   : > { %872 = vmatpush3.bf16.msra.mxu0 %v425_v16  ;;  %873 = vmatprep.mubr.msk.bf16.mxu0 %vm1129_vm0, %v1128_v0 }
 0x3cc   : > { %883 = vmatprep.subr.bf16.mxu0 %v1128_v0  ;;  %v991_v18 = vpop.eup %990 }
 0x3cd   : > { %v534_v20 = vmul.f32 %v991_v18, %v983_v61 }
 0x3cf   : > { %v535_v24 = vpack.c.bf16 %v534_v20, %v534_v20 }
 0x3d2   : > { %874 = vmatmul.mubr.msk.bf16.vlgmr.msra.gmra.mrb[8].mxu0 %vm246_vm2, %v418_v17 }
 0x3d3   : > { %885 = vmatprep.mubr.msk.bf16.mxu0 %vm1129_vm0, %v1128_v0 }
 0x3ee   : > { %v649_v19 = vpop.xlane.xlu1 %648 }
 0x3ef   : > { %992 = vrcp.f32 %v649_v19 }
 0x3f2   : > { %v537_v21 = vpop.permute.xlu1 %536 }
 0x3f3   : > { %v542_v22 = vsel %vm311_vm4, %v537_v21, 0 }
 0x3f4   : > { %884 = vmatpush3.bf16.msra.mxu0 %v542_v22 }
 0x3f5   : > { %895 = vmatprep.subr.bf16.mxu0 %v1128_v0 }
 0x3f7   : > { %886 = vmatmul.mubr.msk.bf16.vlgmr.msra.gmra.mrb[12].mxu0 %vm246_vm2, %v535_v24 }
 0x3f8   : > { %896 = vmatpush3.bf16.msra.mxu0 %v659_v25  ;;  %897 = vmatprep.mubr.msk.bf16.mxu0 %vm1129_vm0, %v1128_v0 }
 0x3f9   : > { %v993_v26 = vpop.eup %992 }
 0x3fa   : > { %v651_v27 = vmul.f32 %v993_v26, %v985_v3 }
 0x3fc   : > { %v652_v28 = vpack.c.bf16 %v651_v27, %v651_v27 }
 0x3ff   : > { %898 = vmatmul.mubr.msk.bf16.vlgmr.msra.gmra.mrb[16].mxu0 %vm246_vm2, %v652_v28 }
 0x49d   : > { %v349_v29 = vpop.f32.mrb[4].mxu0 }
 0x49e   : > { %355 = vst.msk [vmem:[%s1382_s7] sm:$0xff] %vm246_vm2, %v349_v29  ;;  %v863_v30 = vpop.f32.mrb[5].mxu0 }
 0x49f   : > { %v352_v31 = vpop.f32.mrb[6].mxu0 }
 0x4a0   : > { %v864_v32 = vpop.f32.mrb[7].mxu0 }
 0x4a5   : > { %v461_v33 = vpop.f32.mrb[8].mxu0 }
 0x4a6   : > { %468 = vrot.lane.b32.xlu1 %v461_v33, %s1141_s18  ;;  %v875_v34 = vpop.f32.mrb[9].mxu0 }
 0x4a7   : > { %v464_v0 = vpop.f32.mrb[10].mxu0 }
 0x4a8   : > { %v876_v35 = vpop.f32.mrb[11].mxu0 }
 0x4ca   : > { %v578_v36 = vpop.f32.mrb[12].mxu0 }
 0x4cb   : > { %585 = vrot.lane.b32.xlu0 %v578_v36, %s1142_s24  ;;  %v887_v37 = vpop.f32.mrb[13].mxu0 }
 0x4cc   : > { %v581_v38 = vpop.f32.mrb[14].mxu0 }
 0x4cd   : > { %v888_v39 = vpop.f32.mrb[15].mxu0 }
 0x4d2   : > { %v695_v40 = vpop.f32.mrb[16].mxu0 }
 0x4d3   : > { %702 = vrot.lane.b32.xlu1 %v695_v40, %s1143_s25  ;;  %v899_v41 = vpop.f32.mrb[17].mxu0 }
 0x4d4   : > { %v698_v42 = vpop.f32.mrb[18].mxu0 }
 0x4d5   : > { %v900_v43 = vpop.f32.mrb[19].mxu0 }
 0x518   : > { %v469_v44 = vpop.permute.xlu1 %468 }
 0x519   : > { %472 = vst.msk [vmem:[%s1382_s7] sm:$0xff] %vm471_vm5, %v469_v44 }
 0x53d   : > { %v586_v45 = vpop.permute.xlu0 %585 }
 0x53e   : > { %589 = vst.msk [vmem:[%s1382_s7] sm:$0xff] %vm588_vm6, %v586_v45 }
 0x545   : > { %v703_v46 = vpop.permute.xlu1 %702 }
 0x546   : > { %706 = vst.msk [vmem:[%s1382_s7] sm:$0xff] %vm705_vm7, %v703_v46 }
 0x547   : > { %1065 = shalt.err (!%p1062_p7)
}
 0x548   : > { %s1066_s20 = scalar_lea.hbm %s1393_s17, 128  ;;  %s1070_s4 = scalar_lea.hbm %s1440_s2, 256 }
 0x549   : > { %p1067_p9 = scmp.ne.s32.totalorder %s1393_s17, %s1066_s20  ;;  %p1071_p0 = scmp.lt.u32.totalorder %s1393_s17, %s1440_s2 }
 0x54a   : > { %p1072_p11 = scmp.lt.u32.totalorder %s1070_s4, %s1066_s20  ;;  %p1074_p4 = scmp.lt.u32.totalorder %s1066_s20, %s1393_s17 }
 0x54b   : > { %p1068_p2 = pnand %p1067_p9, %p1251_p12 }
 0x54c   : > { %p1073_p1 = por %p1072_p11, %p1071_p0 }
 0x54d   : > { %p1069_p5 = pneg %p1068_p2 }
 0x54e   : > { %p1075_p6 = por %p1074_p4, %p1073_p1 }
 0x550   : > { %p1076_p8 = pnand %p1075_p6, %p1069_p5 }
 0x552   : > { %1079 = shalt.err (!%p1076_p8)
}
 0x553   : > { %907 = dma.vmem_to_hbm [thread:$0]  (%p1251_p12), %s1395_s19, 128, %s1393_s17, %s708_s27  }
 0x554 PF: > { %s733_s7 = sand.u32 1, %s1110_s9   ;;  %p1455_p10 = scmp.ne.s32.totalorder %s1445_s16, 0 }
 0x555   : > { %p1456_p13 = scmp.ge.s32.totalorder %s1122_s12, 2  ;;  %s734_s18 = scalar_lea.sflag [#allocation4], %s733_s7 }
 0x557   : > { %p918_p3 = pnand %p1456_p13, %p1455_p10 }
 0x559   : > { %1105 = dma.done.wait (!%p918_p3), %s734_s18, 128  }
 0x55a   : > { %1107 = vsyncadd (!%p918_p3), %s734_s18, 4294967168  ;;  %p16_p7 = scmp.ge.s32.totalorder %s1216_s21, 4   ;;  %s1457_s9 = smov %s1114_s10 }
 0x55b   : > { %s1458_s10 = smov %s1118_s11  ;;  %s1459_s11 = smov %s1247_s8 }
 0x55c   : > { %s1460_s12 = smov %s1216_s21  ;;  %18 = sbr.rel (!%p16_p7) target bundleno = 6 (0x6), region = 77 }
 0x563   :  { %739 = vsyncpa [#allocation3], 1 }
 0x564   :  { %741 = vsyncpa [#allocation3 + $0x1], 1 }
 0x565   :  { %742 = vsyncpa [#allocation6], 1 }
 0x566   :  { %743 = vsyncpa [#allocation4], 1 }
 0x567   :  { %745 = vsyncpa [#allocation4 + $0x1], 1 }

</bundles_post_ra>
